<compile_context>
chip_gen: v7x
topology: tpu7x:2x2x1
jax: 0.10.0
libtpu: 0.0.40
codegen_flags: <defaults>
</compile_context>

<pallas_src>
import functools

import jax
import jax.numpy as jnp
from jax import lax
from jax.experimental import pallas as pl
from jax.experimental.pallas import tpu as pltpu


# ----------------------------- Pallas kernel -----------------------------

def _encoder_stack_kernel(
    x_ref, pos_ref,
    wqk_ref, bqk_ref, wv_ref, wo_ref, w1_ref, b1_ref, w2_ref, vecs_ref,
    o_ref,
    qk_sc, v_sc, ctx_sc,
    *, n_head: int, b_chunk: int, seq_len: int,
):
    """One grid step == one encoder layer applied to one chunk of batch tokens.

    grid = (batch_chunks, num_layers); the activation carry is resident in the
    output block (same block index across the layer axis).
    """
    layer = pl.program_id(1)
    n_layers = pl.num_programs(1)

    H, L = n_head, seq_len
    CT, C = x_ref.shape                  # chunk tokens (b_chunk * L), channels
    Dh = C // H
    cd = qk_sc.dtype                     # matmul operand dtype (bf16 or f32)
    f32 = jnp.float32

    # Layer 0 of this chunk: initialize the resident carry from the input.
    @pl.when(layer == 0)
    def _():
        o_ref[...] = x_ref[...]

    act = o_ref[...].astype(f32)                      # (CT, C) residual carry (f32)
    vecs = vecs_ref[0]                                # (7, C): ln1_g, ln1_b, ln2_g, ln2_b, bo, b2, bv

    # ---------------- dense, lane-wide QKV projections (MXU-friendly) ----------------
    qk_in = (act + pos_ref[...].astype(f32)).astype(cd)          # pos added to q/k only
    qk = jnp.dot(qk_in, wqk_ref[0],
                 preferred_element_type=f32) + bqk_ref[0]        # (CT, 2C), q pre-scaled
    v = jnp.dot(act.astype(cd), wv_ref[0],
                preferred_element_type=f32) + vecs[6:7, :]       # (CT, C)
    qk_sc[...] = qk.astype(cd)
    v_sc[...] = v.astype(cd)

    # ---------------- attention core: loop over batch elements ----------------
    # pl.loop bounds live ranges (one (L,*) working set at a time); heads are
    # handled with static lane slices -- no reshapes / transposes in-kernel.
    @pl.loop(0, b_chunk)
    def _(b):
        off = pl.multiple_of(b * L, L)
        qkb = qk_sc[pl.ds(off, L), :]                 # (L, 2C)
        vb = v_sc[pl.ds(off, L), :]                   # (L, C)
        ctx_parts = []
        for h in range(H):                            # H is small and static
            qh = qkb[:, h * Dh:(h + 1) * Dh]          # (L, Dh)
            kh = qkb[:, C + h * Dh:C + (h + 1) * Dh]  # (L, Dh)
            vh = vb[:, h * Dh:(h + 1) * Dh]           # (L, Dh)
            s = jnp.einsum('qd,kd->qk', qh, kh,
                           preferred_element_type=f32)            # (L, L) f32
            s = s - jnp.max(s, axis=-1, keepdims=True)
            p = jnp.exp(s)
            p = p * (1.0 / jnp.sum(p, axis=-1, keepdims=True))    # exact normalize
            ctx_parts.append(jnp.dot(p.astype(cd), vh,
                                     preferred_element_type=f32)) # (L, Dh)
        ctx_b = ctx_parts[0] if H == 1 else jnp.concatenate(ctx_parts, axis=-1)
        ctx_sc[pl.ds(off, L), :] = ctx_b.astype(cd)   # concat-heads layout (L, C)

    # ---------------- dense output projection + residual + LayerNorm 1 ----------------
    attn = jnp.dot(ctx_sc[...], wo_ref[0],
                   preferred_element_type=f32) + vecs[4:5, :]     # (CT, C)
    h1 = act + attn
    inv_c = 1.0 / C
    mu1 = jnp.sum(h1, axis=-1, keepdims=True) * inv_c             # fused stats:
    ex2 = jnp.sum(h1 * h1, axis=-1, keepdims=True) * inv_c        # var = E[x^2]-mu^2
    h1 = (h1 - mu1) * lax.rsqrt(ex2 - mu1 * mu1 + 1e-5) * vecs[0:1, :] + vecs[1:2, :]

    # ---------------- FFN + residual + LayerNorm 2 ----------------
    ff = jnp.dot(h1.astype(cd), w1_ref[0], preferred_element_type=f32) + b1_ref[0]
    ff = jnp.maximum(ff, 0.0)
    ff = jnp.dot(ff.astype(cd), w2_ref[0], preferred_element_type=f32) + vecs[5:6, :]
    h2 = h1 + ff
    mu2 = jnp.sum(h2, axis=-1, keepdims=True) * inv_c
    ey2 = jnp.sum(h2 * h2, axis=-1, keepdims=True) * inv_c
    out = (h2 - mu2) * lax.rsqrt(ey2 - mu2 * mu2 + 1e-5) * vecs[2:3, :] + vecs[3:4, :]

    # Carry to the next layer (and final writeback on the last layer).
    # TODO(synk): for bf16 src the inter-layer carry is bf16; keep an f32
    # scratch instead if long stacks need an exact-f32 residual stream.
    o_ref[...] = out.astype(o_ref.dtype)
    del n_layers


# ----------------------------- host-side weight packing -----------------------------

def _pack_layer(p, n_head, compute_dtype):
    """Fuse + cast one layer's params: [Wq*scale | Wk], packed small vectors."""
    C = p["wq"].shape[0]
    Dh = C // n_head
    scale = 1.0 / float(Dh) ** 0.5                       # fold 1/sqrt(Dh) into Q
    wqk = jnp.concatenate([p["wq"] * scale, p["wk"]], axis=1)      # (C, 2C)
    bqk = jnp.concatenate([p["bq"] * scale, p["bk"]], axis=1)      # (1, 2C) f32
    vecs = jnp.concatenate([p["ln1_g"], p["ln1_b"], p["ln2_g"], p["ln2_b"],
                            p["bo"], p["b2"], p["bv"]], axis=0)    # (7, C) f32
    return dict(
        wqk=wqk.astype(compute_dtype),
        bqk=bqk,
        wv=p["wv"].astype(compute_dtype),
        wo=p["wo"].astype(compute_dtype),          # concat-heads layout == PyTorch out_proj
        w1=p["w1"].astype(compute_dtype),
        b1=p["b1"],
        w2=p["w2"].astype(compute_dtype),
        vecs=vecs,
    )


def _stack_layers(layer_params, n_head, compute_dtype):
    packed = [_pack_layer(p, n_head, compute_dtype) for p in layer_params]
    return {k: jnp.stack([q[k] for q in packed], axis=0) for k in packed[0]}


def _auto_batch_chunks(B):
    """2 chunks on dual-TensorCore chips (v7x) when B is even, else 1."""
    if B % 2 != 0:
        return 1
    try:
        info = pltpu.get_tpu_info()
        for name in ("num_tensorcores", "tensorcore_count", "num_cores",
                     "cores_per_chip"):
            n = getattr(info, name, None)
            if isinstance(n, int) and n >= 2:
                return 2
    except Exception:
        pass
    return 1


# ----------------------------- wrapper -----------------------------

def encoder_forward(src, pos, layer_params, *, n_head, batch_chunks=None,
                    compute_dtype=jnp.bfloat16):
    """Encoder.forward (eval) as a single fused Pallas call over all layers."""
    B, L, C = src.shape
    assert C % n_head == 0
    NL = len(layer_params)
    F = layer_params[0]["w1"].shape[1]

    if batch_chunks is None:
        batch_chunks = _auto_batch_chunks(B)
    assert B % batch_chunks == 0
    b_chunk = B // batch_chunks
    CT = b_chunk * L

    w = _stack_layers(layer_params, n_head, compute_dtype)

    x2 = src.reshape(B * L, C)
    p2 = pos.reshape(B * L, C)

    tok_map = lambda c, l: (c, 0)          # chunk-indexed, resident across layers
    w3_map = lambda c, l: (l, 0, 0)        # layer-indexed weights

    in_specs = [
        pl.BlockSpec((CT, C), tok_map),                 # x
        pl.BlockSpec((CT, C), tok_map),                 # pos
        pl.BlockSpec((1, C, 2 * C), w3_map),            # wqk  ([Wq*scale | Wk])
        pl.BlockSpec((1, 1, 2 * C), w3_map),            # bqk
        pl.BlockSpec((1, C, C), w3_map),                # wv
        pl.BlockSpec((1, C, C), w3_map),                # wo
        pl.BlockSpec((1, C, F), w3_map),                # w1
        pl.BlockSpec((1, 1, F), w3_map),                # b1
        pl.BlockSpec((1, F, C), w3_map),                # w2
        pl.BlockSpec((1, 7, C), w3_map),                # ln1_g, ln1_b, ln2_g, ln2_b, bo, b2, bv
    ]

    # VMEM budget: double-buffered x/pos/out blocks + double-buffered layer
    # weights + the three scratches, with headroom (explicit per review).
    cd_size = jnp.dtype(compute_dtype).itemsize
    weight_bytes = sum(int(a.nbytes) for a in w.values()) // NL     # per layer
    vmem_need = (3 * 2 * CT * C * src.dtype.itemsize
                 + 2 * weight_bytes
                 + 4 * CT * C * cd_size
                 + (2 << 20))
    vmem_limit = max(32 << 20, min(64 << 20, int(1.5 * vmem_need)))

    # Cost hint so XLA can schedule around the single fused call.
    flops = NL * batch_chunks * (CT * (8 * C * C + 4 * C * F) + 4 * CT * L * C)
    transc = NL * B * n_head * L * L
    bytes_accessed = (batch_chunks * 3 * CT * C * src.dtype.itemsize
                      + batch_chunks * NL * weight_bytes)

    kernel = functools.partial(_encoder_stack_kernel, n_head=n_head,
                               b_chunk=b_chunk, seq_len=L)
    out = pl.pallas_call(
        kernel,
        out_shape=jax.ShapeDtypeStruct((B * L, C), src.dtype),
        grid=(batch_chunks, NL),
        in_specs=in_specs,
        out_specs=pl.BlockSpec((CT, C), tok_map),
        scratch_shapes=[
            pltpu.VMEM((CT, 2 * C), compute_dtype),    # fused q|k projections
            pltpu.VMEM((CT, C), compute_dtype),        # v projection
            pltpu.VMEM((CT, C), compute_dtype),        # context (concat-heads)
        ],
        compiler_params=pltpu.CompilerParams(
            dimension_semantics=("parallel", "arbitrary"),
            vmem_limit_bytes=vmem_limit),
        cost_estimate=pl.CostEstimate(flops=int(flops),
                                      transcendentals=int(transc),
                                      bytes_accessed=int(bytes_accessed)),
    )(x2, p2, w["wqk"], w["bqk"], w["wv"], w["wo"],
      w["w1"], w["b1"], w["w2"], w["vecs"])

    return out.reshape(B, L, C)


# ----------------------------- param init & pure-JAX reference -----------------------------

def _xavier_uniform(key, shape):
    fan_in, fan_out = shape[0], shape[1]
    limit = jnp.sqrt(6.0 / (fan_in + fan_out))
    return jax.random.uniform(key, shape, jnp.float32, -limit, limit)


def init_layer_params(key, d_model, dim_ffn):
    ks = jax.random.split(key, 6)
    C, F = d_model, dim_ffn
    return {
        # weights stored so that y = x @ W + b
        "wq": _xavier_uniform(ks[0], (C, C)), "bq": jnp.zeros((1, C), jnp.float32),
        "wk": _xavier_uniform(ks[1], (C, C)), "bk": jnp.zeros((1, C), jnp.float32),
        "wv": _xavier_uniform(ks[2], (C, C)), "bv": jnp.zeros((1, C), jnp.float32),
        "wo": _xavier_uniform(ks[3], (C, C)), "bo": jnp.zeros((1, C), jnp.float32),
        "ln1_g": jnp.ones((1, C), jnp.float32), "ln1_b": jnp.zeros((1, C), jnp.float32),
        "ln2_g": jnp.ones((1, C), jnp.float32), "ln2_b": jnp.zeros((1, C), jnp.float32),
        "w1": _xavier_uniform(ks[4], (C, F)), "b1": jnp.zeros((1, F), jnp.float32),
        "w2": _xavier_uniform(ks[5], (F, C)), "b2": jnp.zeros((1, C), jnp.float32),
    }


def _layer_norm(x, g, b):
    mu = jnp.mean(x, axis=-1, keepdims=True)
    var = jnp.mean((x - mu) ** 2, axis=-1, keepdims=True)
    return (x - mu) * lax.rsqrt(var + 1e-5) * g + b


def _reference_forward(src, pos, layer_params, *, n_head):
    """Plain-JAX f32 reference mirroring the PyTorch eval forward."""
    B, L, C = src.shape
    H = n_head
    Dh = C // H
    x = src.astype(jnp.float32)
    pe = pos.astype(jnp.float32)
    for p in layer_params:
        qk_in = x + pe
        q = qk_in @ p["wq"] + p["bq"]
        k = qk_in @ p["wk"] + p["bk"]
        v = x @ p["wv"] + p["bv"]
        q = q.reshape(B, L, H, Dh).transpose(0, 2, 1, 3)
        k = k.reshape(B, L, H, Dh).transpose(0, 2, 1, 3)
        v = v.reshape(B, L, H, Dh).transpose(0, 2, 1, 3)
        s = jnp.einsum('bhqd,bhkd->bhqk', q, k) / jnp.sqrt(jnp.float32(Dh))
        a = jax.nn.softmax(s, axis=-1)
        ctx = jnp.einsum('bhqk,bhkd->bhqd', a, v)
        ctx = ctx.transpose(0, 2, 1, 3).reshape(B, L, C)
        attn = ctx @ p["wo"] + p["bo"]
        h1 = _layer_norm(x + attn, p["ln1_g"], p["ln1_b"])
        ff = jnp.maximum(h1 @ p["w1"] + p["b1"], 0.0) @ p["w2"] + p["b2"]
        x = _layer_norm(h1 + ff, p["ln2_g"], p["ln2_b"])
    return x


# ----------------------------- Demo -----------------------------

if __name__ == "__main__":
    d_model, n_head, num_layers, dim_ffn = 32, 4, 2, 64
    B, L = 2, 8

    key = jax.random.PRNGKey(0)
    k_src, k_pos, k_par = jax.random.split(key, 3)

    src = jax.random.normal(k_src, (B, L, d_model), jnp.float32)
    pos = jax.random.normal(k_pos, (B, L, d_model), jnp.float32)

    layer_keys = jax.random.split(k_par, num_layers)
    layer_params = [init_layer_params(k, d_model, dim_ffn) for k in layer_keys]

    # NOTE: add_bf / batch_layers path is training-only (self.training), so it
    # is intentionally not part of the inference kernel.
    ref = _reference_forward(src, pos, layer_params, n_head=n_head)

    # 1) Exact-parity path: f32 matmul operands, single chunk (tight check).
    out_f32 = encoder_forward(src, pos, layer_params, n_head=n_head,
                              batch_chunks=1, compute_dtype=jnp.float32)
    out_f32 = jax.block_until_ready(out_f32)
    assert out_f32.shape == (B, L, d_model)
    err_f32 = float(jnp.max(jnp.abs(out_f32.astype(jnp.float32) - ref)))
    assert err_f32 < 1e-3, f"f32 path max abs error vs reference: {err_f32}"

    # 2) Fast path (default): bf16 matmul operands / f32 accumulation,
    #    auto-selected batch_chunks.  Error is dominated by bf16 rounding.
    out_bf = encoder_forward(src, pos, layer_params, n_head=n_head)
    out_bf = jax.block_until_ready(out_bf)
    assert out_bf.shape == (B, L, d_model)
    assert bool(jnp.all(jnp.isfinite(out_bf)))
    err_bf = float(jnp.max(jnp.abs(out_bf.astype(jnp.float32) - ref)))
    assert err_bf < 0.2, f"bf16 path max abs error vs f32 reference: {err_bf}"

    print("KERNEL_OK")
</pallas_src>

<mosaic_0001>
module attributes {stable_mosaic.version = 11 : i64} {
  func.func @_encoder_stack_kernel(%arg0: i32, %arg1: i32, %arg2: memref<16x32xf32, #tpu.memory_space<vmem>>, %arg3: memref<16x32xf32, #tpu.memory_space<vmem>>, %arg4: memref<1x32x64xf32, #tpu.memory_space<vmem>>, %arg5: memref<1x1x64xf32, #tpu.memory_space<vmem>>, %arg6: memref<1x32x32xf32, #tpu.memory_space<vmem>>, %arg7: memref<1x32x32xf32, #tpu.memory_space<vmem>>, %arg8: memref<1x32x64xf32, #tpu.memory_space<vmem>>, %arg9: memref<1x1x64xf32, #tpu.memory_space<vmem>>, %arg10: memref<1x64x32xf32, #tpu.memory_space<vmem>>, %arg11: memref<1x7x32xf32, #tpu.memory_space<vmem>>, %arg12: memref<16x32xf32, #tpu.memory_space<vmem>>, %arg13: memref<16x64xf32, #tpu.memory_space<vmem>>, %arg14: memref<16x32xf32, #tpu.memory_space<vmem>>, %arg15: memref<16x32xf32, #tpu.memory_space<vmem>>) attributes {dimension_semantics = [#tpu.dimension_semantics<parallel>, #tpu.dimension_semantics<arbitrary>], iteration_bounds = array<i64: 1, 2>, scalar_prefetch = 0 : i64, scratch_operands = 3 : i64, tpu.core_type = #tpu.core_type<tc>, window_params = [{transform_indices = @transform_0, window_bounds = array<i64: 16, 32>}, {transform_indices = @transform_1, window_bounds = array<i64: 16, 32>}, {transform_indices = @transform_2, window_bounds = array<i64: 1, 32, 64>}, {transform_indices = @transform_3, window_bounds = array<i64: 1, 1, 64>}, {transform_indices = @transform_4, window_bounds = array<i64: 1, 32, 32>}, {transform_indices = @transform_5, window_bounds = array<i64: 1, 32, 32>}, {transform_indices = @transform_6, window_bounds = array<i64: 1, 32, 64>}, {transform_indices = @transform_7, window_bounds = array<i64: 1, 1, 64>}, {transform_indices = @transform_8, window_bounds = array<i64: 1, 64, 32>}, {transform_indices = @transform_9, window_bounds = array<i64: 1, 7, 32>}, {transform_indices = @transform_10, window_bounds = array<i64: 16, 32>}]} {
    %c0_i32 = arith.constant 0 : i32
    %0 = arith.cmpi eq, %arg1, %c0_i32 : i32
    %1 = arith.extui %0 : i1 to i32
    %c0_i32_0 = arith.constant 0 : i32
    %2 = arith.cmpi ne, %1, %c0_i32_0 : i32
    scf.if %2 {
      %c0_53 = arith.constant 0 : index
      %c0_54 = arith.constant 0 : index
      %97 = vector.load %arg2[%c0_53, %c0_54] : memref<16x32xf32, #tpu.memory_space<vmem>>, vector<16x32xf32>
      %c0_55 = arith.constant 0 : index
      %c0_56 = arith.constant 0 : index
      %98 = vector.load %arg12[%c0_55, %c0_56] : memref<16x32xf32, #tpu.memory_space<vmem>>, vector<16x32xf32>
      tpu.vector_store %arg12[%c0_55, %c0_56], %97 {strides = array<i32>} : memref<16x32xf32, #tpu.memory_space<vmem>>, vector<16x32xf32>,
    } else {
    }
    %c0 = arith.constant 0 : index
    %c0_1 = arith.constant 0 : index
    %3 = vector.load %arg12[%c0, %c0_1] : memref<16x32xf32, #tpu.memory_space<vmem>>, vector<16x32xf32>
    %c0_2 = arith.constant 0 : index
    %c0_3 = arith.constant 0 : index
    %c0_4 = arith.constant 0 : index
    %4 = vector.load %arg11[%c0_2, %c0_3, %c0_4] : memref<1x7x32xf32, #tpu.memory_space<vmem>>, vector<1x7x32xf32>
    %5 = vector.shape_cast %4 : vector<1x7x32xf32> to vector<7x32xf32>
    %c0_5 = arith.constant 0 : index
    %c0_6 = arith.constant 0 : index
    %6 = vector.load %arg3[%c0_5, %c0_6] : memref<16x32xf32, #tpu.memory_space<vmem>>, vector<16x32xf32>
    %7 = arith.addf %3, %6 : vector<16x32xf32>
    %c0_7 = arith.constant 0 : index
    %c0_8 = arith.constant 0 : index
    %c0_9 = arith.constant 0 : index
    %8 = vector.load %arg4[%c0_7, %c0_8, %c0_9] : memref<1x32x64xf32, #tpu.memory_space<vmem>>, vector<1x32x64xf32>
    %9 = vector.shape_cast %8 : vector<1x32x64xf32> to vector<32x64xf32>
    %cst = arith.constant dense<0.000000e+00> : vector<16x64xf32>
    %10 = tpu.matmul %7, %9, %cst {dimension_numbers = #tpu.dot_dimension_numbers<[1], [0], [0], [1], [0, 0, 1, 1], [], []>} : vector<16x32xf32>, vector<32x64xf32>, vector<16x64xf32> -> vector<16x64xf32>
    %c0_10 = arith.constant 0 : index
    %c0_11 = arith.constant 0 : index
    %c0_12 = arith.constant 0 : index
    %11 = vector.load %arg5[%c0_10, %c0_11, %c0_12] : memref<1x1x64xf32, #tpu.memory_space<vmem>>, vector<1x1x64xf32>
    %12 = vector.shape_cast %11 : vector<1x1x64xf32> to vector<1x64xf32>
    %13 = vector.broadcast %12 : vector<1x64xf32> to vector<16x64xf32>
    %14 = arith.addf %10, %13 : vector<16x64xf32>
    %c0_13 = arith.constant 0 : index
    %c0_14 = arith.constant 0 : index
    %c0_15 = arith.constant 0 : index
    %15 = vector.load %arg6[%c0_13, %c0_14, %c0_15] : memref<1x32x32xf32, #tpu.memory_space<vmem>>, vector<1x32x32xf32>
    %16 = vector.shape_cast %15 : vector<1x32x32xf32> to vector<32x32xf32>
    %cst_16 = arith.constant dense<0.000000e+00> : vector<16x32xf32>
    %17 = tpu.matmul %3, %16, %cst_16 {dimension_numbers = #tpu.dot_dimension_numbers<[1], [0], [0], [1], [0, 0, 1, 1], [], []>} : vector<16x32xf32>, vector<32x32xf32>, vector<16x32xf32> -> vector<16x32xf32>
    %18 = vector.extract_strided_slice %5 {offsets = [6, 0], sizes = [1, 32], strides = [1, 1]} : vector<7x32xf32> to vector<1x32xf32>
    %19 = vector.broadcast %18 : vector<1x32xf32> to vector<16x32xf32>
    %20 = arith.addf %17, %19 : vector<16x32xf32>
    %c0_17 = arith.constant 0 : index
    %c0_18 = arith.constant 0 : index
    %21 = vector.load %arg13[%c0_17, %c0_18] : memref<16x64xf32, #tpu.memory_space<vmem>>, vector<16x64xf32>
    tpu.vector_store %arg13[%c0_17, %c0_18], %14 {strides = array<i32>} : memref<16x64xf32, #tpu.memory_space<vmem>>, vector<16x64xf32>,
    %c0_19 = arith.constant 0 : index
    %c0_20 = arith.constant 0 : index
    %22 = vector.load %arg14[%c0_19, %c0_20] : memref<16x32xf32, #tpu.memory_space<vmem>>, vector<16x32xf32>
    tpu.vector_store %arg14[%c0_19, %c0_20], %20 {strides = array<i32>} : memref<16x32xf32, #tpu.memory_space<vmem>>, vector<16x32xf32>,
    %c0_i32_21 = arith.constant 0 : i32
    %c2_i32 = arith.constant 2 : i32
    %23 = arith.addi %c0_i32_21, %c2_i32 : i32
    %c1_i32 = arith.constant 1 : i32
    scf.for %arg16 = %c0_i32_21 to %23 step %c1_i32  : i32 {
      %c1_i32_53 = arith.constant 1 : i32
      %97 = arith.muli %arg16, %c1_i32_53 : i32
      %c0_i32_54 = arith.constant 0 : i32
      %98 = arith.addi %c0_i32_54, %97 : i32
      %c8_i32 = arith.constant 8 : i32
      %99 = arith.muli %98, %c8_i32 : i32
      %100 = tpu.assume_multiple %99, 8 : i32
      %101 = arith.index_cast %100 : i32 to index
      %c0_55 = arith.constant 0 : index
      %102 = vector.load %arg13[%101, %c0_55] : memref<16x64xf32, #tpu.memory_space<vmem>>, vector<8x64xf32>
      %103 = arith.index_cast %100 : i32 to index
      %c0_56 = arith.constant 0 : index
      %104 = vector.load %arg14[%103, %c0_56] : memref<16x32xf32, #tpu.memory_space<vmem>>, vector<8x32xf32>
      %105 = vector.extract_strided_slice %102 {offsets = [0, 0], sizes = [8, 8], strides = [1, 1]} : vector<8x64xf32> to vector<8x8xf32>
      %106 = vector.extract_strided_slice %102 {offsets = [0, 32], sizes = [8, 8], strides = [1, 1]} : vector<8x64xf32> to vector<8x8xf32>
      %107 = vector.extract_strided_slice %104 {offsets = [0, 0], sizes = [8, 8], strides = [1, 1]} : vector<8x32xf32> to vector<8x8xf32>
      "tpu.trace_start"() <{level = 10 : i32, message = "qd,kd->qk"}> : () -> ()
      %cst_57 = arith.constant dense<0.000000e+00> : vector<8x8xf32>
      %108 = tpu.matmul %105, %106, %cst_57 {dimension_numbers = #tpu.dot_dimension_numbers<[1], [1], [0], [0], [0, 0, 1, 0], [], []>} : vector<8x8xf32>, vector<8x8xf32>, vector<8x8xf32> -> vector<8x8xf32>
      "tpu.trace_stop"() : () -> ()
      %cst_58 = arith.constant dense<0xFF800000> : vector<8xf32>
      %109 = vector.multi_reduction <maximumf>, %108, %cst_58 [1] : vector<8x8xf32> to vector<8xf32>
      %110 = vector.shape_cast %109 : vector<8xf32> to vector<8x1xf32>
      %111 = vector.broadcast %110 : vector<8x1xf32> to vector<8x8xf32>
      %112 = arith.subf %108, %111 : vector<8x8xf32>
      %113 = math.exp %112 : vector<8x8xf32>
      %cst_59 = arith.constant dense<0.000000e+00> : vector<8xf32>
      %114 = vector.multi_reduction <add>, %113, %cst_59 [1] : vector<8x8xf32> to vector<8xf32>
      %115 = vector.shape_cast %114 : vector<8xf32> to vector<8x1xf32>
      %cst_60 = arith.constant 1.000000e+00 : f32
      %116 = vector.broadcast %cst_60 : f32 to vector<8x1xf32>
      %117 = arith.divf %116, %115 : vector<8x1xf32>
      %118 = vector.broadcast %117 : vector<8x1xf32> to vector<8x8xf32>
      %119 = arith.mulf %113, %118 : vector<8x8xf32>
      %cst_61 = arith.constant dense<0.000000e+00> : vector<8x8xf32>
      %120 = tpu.matmul %119, %107, %cst_61 {dimension_numbers = #tpu.dot_dimension_numbers<[1], [0], [0], [1], [0, 0, 1, 1], [], []>} : vector<8x8xf32>, vector<8x8xf32>, vector<8x8xf32> -> vector<8x8xf32>
      %121 = vector.extract_strided_slice %102 {offsets = [0, 8], sizes = [8, 8], strides = [1, 1]} : vector<8x64xf32> to vector<8x8xf32>
      %122 = vector.extract_strided_slice %102 {offsets = [0, 40], sizes = [8, 8], strides = [1, 1]} : vector<8x64xf32> to vector<8x8xf32>
      %123 = vector.extract_strided_slice %104 {offsets = [0, 8], sizes = [8, 8], strides = [1, 1]} : vector<8x32xf32> to vector<8x8xf32>
      "tpu.trace_start"() <{level = 10 : i32, message = "qd,kd->qk"}> : () -> ()
      %cst_62 = arith.constant dense<0.000000e+00> : vector<8x8xf32>
      %124 = tpu.matmul %121, %122, %cst_62 {dimension_numbers = #tpu.dot_dimension_numbers<[1], [1], [0], [0], [0, 0, 1, 0], [], []>} : vector<8x8xf32>, vector<8x8xf32>, vector<8x8xf32> -> vector<8x8xf32>
      "tpu.trace_stop"() : () -> ()
      %cst_63 = arith.constant dense<0xFF800000> : vector<8xf32>
      %125 = vector.multi_reduction <maximumf>, %124, %cst_63 [1] : vector<8x8xf32> to vector<8xf32>
      %126 = vector.shape_cast %125 : vector<8xf32> to vector<8x1xf32>
      %127 = vector.broadcast %126 : vector<8x1xf32> to vector<8x8xf32>
      %128 = arith.subf %124, %127 : vector<8x8xf32>
      %129 = math.exp %128 : vector<8x8xf32>
      %cst_64 = arith.constant dense<0.000000e+00> : vector<8xf32>
      %130 = vector.multi_reduction <add>, %129, %cst_64 [1] : vector<8x8xf32> to vector<8xf32>
      %131 = vector.shape_cast %130 : vector<8xf32> to vector<8x1xf32>
      %cst_65 = arith.constant 1.000000e+00 : f32
      %132 = vector.broadcast %cst_65 : f32 to vector<8x1xf32>
      %133 = arith.divf %132, %131 : vector<8x1xf32>
      %134 = vector.broadcast %133 : vector<8x1xf32> to vector<8x8xf32>
      %135 = arith.mulf %129, %134 : vector<8x8xf32>
      %cst_66 = arith.constant dense<0.000000e+00> : vector<8x8xf32>
      %136 = tpu.matmul %135, %123, %cst_66 {dimension_numbers = #tpu.dot_dimension_numbers<[1], [0], [0], [1], [0, 0, 1, 1], [], []>} : vector<8x8xf32>, vector<8x8xf32>, vector<8x8xf32> -> vector<8x8xf32>
      %137 = vector.extract_strided_slice %102 {offsets = [0, 16], sizes = [8, 8], strides = [1, 1]} : vector<8x64xf32> to vector<8x8xf32>
      %138 = vector.extract_strided_slice %102 {offsets = [0, 48], sizes = [8, 8], strides = [1, 1]} : vector<8x64xf32> to vector<8x8xf32>
      %139 = vector.extract_strided_slice %104 {offsets = [0, 16], sizes = [8, 8], strides = [1, 1]} : vector<8x32xf32> to vector<8x8xf32>
      "tpu.trace_start"() <{level = 10 : i32, message = "qd,kd->qk"}> : () -> ()
      %cst_67 = arith.constant dense<0.000000e+00> : vector<8x8xf32>
      %140 = tpu.matmul %137, %138, %cst_67 {dimension_numbers = #tpu.dot_dimension_numbers<[1], [1], [0], [0], [0, 0, 1, 0], [], []>} : vector<8x8xf32>, vector<8x8xf32>, vector<8x8xf32> -> vector<8x8xf32>
      "tpu.trace_stop"() : () -> ()
      %cst_68 = arith.constant dense<0xFF800000> : vector<8xf32>
      %141 = vector.multi_reduction <maximumf>, %140, %cst_68 [1] : vector<8x8xf32> to vector<8xf32>
      %142 = vector.shape_cast %141 : vector<8xf32> to vector<8x1xf32>
      %143 = vector.broadcast %142 : vector<8x1xf32> to vector<8x8xf32>
      %144 = arith.subf %140, %143 : vector<8x8xf32>
      %145 = math.exp %144 : vector<8x8xf32>
      %cst_69 = arith.constant dense<0.000000e+00> : vector<8xf32>
      %146 = vector.multi_reduction <add>, %145, %cst_69 [1] : vector<8x8xf32> to vector<8xf32>
      %147 = vector.shape_cast %146 : vector<8xf32> to vector<8x1xf32>
      %cst_70 = arith.constant 1.000000e+00 : f32
      %148 = vector.broadcast %cst_70 : f32 to vector<8x1xf32>
      %149 = arith.divf %148, %147 : vector<8x1xf32>
      %150 = vector.broadcast %149 : vector<8x1xf32> to vector<8x8xf32>
      %151 = arith.mulf %145, %150 : vector<8x8xf32>
      %cst_71 = arith.constant dense<0.000000e+00> : vector<8x8xf32>
      %152 = tpu.matmul %151, %139, %cst_71 {dimension_numbers = #tpu.dot_dimension_numbers<[1], [0], [0], [1], [0, 0, 1, 1], [], []>} : vector<8x8xf32>, vector<8x8xf32>, vector<8x8xf32> -> vector<8x8xf32>
      %153 = vector.extract_strided_slice %102 {offsets = [0, 24], sizes = [8, 8], strides = [1, 1]} : vector<8x64xf32> to vector<8x8xf32>
      %154 = vector.extract_strided_slice %102 {offsets = [0, 56], sizes = [8, 8], strides = [1, 1]} : vector<8x64xf32> to vector<8x8xf32>
      %155 = vector.extract_strided_slice %104 {offsets = [0, 24], sizes = [8, 8], strides = [1, 1]} : vector<8x32xf32> to vector<8x8xf32>
      "tpu.trace_start"() <{level = 10 : i32, message = "qd,kd->qk"}> : () -> ()
      %cst_72 = arith.constant dense<0.000000e+00> : vector<8x8xf32>
      %156 = tpu.matmul %153, %154, %cst_72 {dimension_numbers = #tpu.dot_dimension_numbers<[1], [1], [0], [0], [0, 0, 1, 0], [], []>} : vector<8x8xf32>, vector<8x8xf32>, vector<8x8xf32> -> vector<8x8xf32>
      "tpu.trace_stop"() : () -> ()
      %cst_73 = arith.constant dense<0xFF800000> : vector<8xf32>
      %157 = vector.multi_reduction <maximumf>, %156, %cst_73 [1] : vector<8x8xf32> to vector<8xf32>
      %158 = vector.shape_cast %157 : vector<8xf32> to vector<8x1xf32>
      %159 = vector.broadcast %158 : vector<8x1xf32> to vector<8x8xf32>
      %160 = arith.subf %156, %159 : vector<8x8xf32>
      %161 = math.exp %160 : vector<8x8xf32>
      %cst_74 = arith.constant dense<0.000000e+00> : vector<8xf32>
      %162 = vector.multi_reduction <add>, %161, %cst_74 [1] : vector<8x8xf32> to vector<8xf32>
      %163 = vector.shape_cast %162 : vector<8xf32> to vector<8x1xf32>
      %cst_75 = arith.constant 1.000000e+00 : f32
      %164 = vector.broadcast %cst_75 : f32 to vector<8x1xf32>
      %165 = arith.divf %164, %163 : vector<8x1xf32>
      %166 = vector.broadcast %165 : vector<8x1xf32> to vector<8x8xf32>
      %167 = arith.mulf %161, %166 : vector<8x8xf32>
      %cst_76 = arith.constant dense<0.000000e+00> : vector<8x8xf32>
      %168 = tpu.matmul %167, %155, %cst_76 {dimension_numbers = #tpu.dot_dimension_numbers<[1], [0], [0], [1], [0, 0, 1, 1], [], []>} : vector<8x8xf32>, vector<8x8xf32>, vector<8x8xf32> -> vector<8x8xf32>
      %169 = tpu.concatenate %120, %136, %152, %168 in 1 : vector<8x8xf32>, vector<8x8xf32>, vector<8x8xf32>, vector<8x8xf32> -> vector<8x32xf32>
      %170 = arith.index_cast %100 : i32 to index
      %c0_77 = arith.constant 0 : index
      %171 = vector.load %arg15[%170, %c0_77] : memref<16x32xf32, #tpu.memory_space<vmem>>, vector<8x32xf32>
      tpu.vector_store %arg15[%170, %c0_77], %169 {strides = array<i32>} : memref<16x32xf32, #tpu.memory_space<vmem>>, vector<8x32xf32>,
    }
    %c2_i32_22 = arith.constant 2 : i32
    %c0_23 = arith.constant 0 : index
    %c0_24 = arith.constant 0 : index
    %24 = vector.load %arg15[%c0_23, %c0_24] : memref<16x32xf32, #tpu.memory_space<vmem>>, vector<16x32xf32>
    %c0_25 = arith.constant 0 : index
    %c0_26 = arith.constant 0 : index
    %c0_27 = arith.constant 0 : index
    %25 = vector.load %arg7[%c0_25, %c0_26, %c0_27] : memref<1x32x32xf32, #tpu.memory_space<vmem>>, vector<1x32x32xf32>
    %26 = vector.shape_cast %25 : vector<1x32x32xf32> to vector<32x32xf32>
    %cst_28 = arith.constant dense<0.000000e+00> : vector<16x32xf32>
    %27 = tpu.matmul %24, %26, %cst_28 {dimension_numbers = #tpu.dot_dimension_numbers<[1], [0], [0], [1], [0, 0, 1, 1], [], []>} : vector<16x32xf32>, vector<32x32xf32>, vector<16x32xf32> -> vector<16x32xf32>
    %28 = vector.extract_strided_slice %5 {offsets = [4, 0], sizes = [1, 32], strides = [1, 1]} : vector<7x32xf32> to vector<1x32xf32>
    %29 = vector.broadcast %28 : vector<1x32xf32> to vector<16x32xf32>
    %30 = arith.addf %27, %29 : vector<16x32xf32>
    %31 = arith.addf %3, %30 : vector<16x32xf32>
    %cst_29 = arith.constant dense<0.000000e+00> : vector<16xf32>
    %32 = vector.multi_reduction <add>, %31, %cst_29 [1] : vector<16x32xf32> to vector<16xf32>
    %33 = vector.shape_cast %32 : vector<16xf32> to vector<16x1xf32>
    %cst_30 = arith.constant 3.125000e-02 : f32
    %34 = vector.broadcast %cst_30 : f32 to vector<16x1xf32>
    %35 = arith.mulf %33, %34 : vector<16x1xf32>
    %36 = arith.mulf %31, %31 : vector<16x32xf32>
    %cst_31 = arith.constant dense<0.000000e+00> : vector<16xf32>
    %37 = vector.multi_reduction <add>, %36, %cst_31 [1] : vector<16x32xf32> to vector<16xf32>
    %38 = vector.shape_cast %37 : vector<16xf32> to vector<16x1xf32>
    %cst_32 = arith.constant 3.125000e-02 : f32
    %39 = vector.broadcast %cst_32 : f32 to vector<16x1xf32>
    %40 = arith.mulf %38, %39 : vector<16x1xf32>
    %41 = vector.broadcast %35 : vector<16x1xf32> to vector<16x32xf32>
    %42 = arith.subf %31, %41 : vector<16x32xf32>
    %43 = arith.mulf %35, %35 : vector<16x1xf32>
    %44 = arith.subf %40, %43 : vector<16x1xf32>
    %cst_33 = arith.constant 9.99999974E-6 : f32
    %45 = vector.broadcast %cst_33 : f32 to vector<16x1xf32>
    %46 = arith.addf %44, %45 : vector<16x1xf32>
    %47 = math.rsqrt %46 : vector<16x1xf32>
    %48 = vector.broadcast %47 : vector<16x1xf32> to vector<16x32xf32>
    %49 = arith.mulf %42, %48 : vector<16x32xf32>
    %50 = vector.extract_strided_slice %5 {offsets = [0, 0], sizes = [1, 32], strides = [1, 1]} : vector<7x32xf32> to vector<1x32xf32>
    %51 = vector.broadcast %50 : vector<1x32xf32> to vector<16x32xf32>
    %52 = arith.mulf %49, %51 : vector<16x32xf32>
    %53 = vector.extract_strided_slice %5 {offsets = [1, 0], sizes = [1, 32], strides = [1, 1]} : vector<7x32xf32> to vector<1x32xf32>
    %54 = vector.broadcast %53 : vector<1x32xf32> to vector<16x32xf32>
    %55 = arith.addf %52, %54 : vector<16x32xf32>
    %c0_34 = arith.constant 0 : index
    %c0_35 = arith.constant 0 : index
    %c0_36 = arith.constant 0 : index
    %56 = vector.load %arg8[%c0_34, %c0_35, %c0_36] : memref<1x32x64xf32, #tpu.memory_space<vmem>>, vector<1x32x64xf32>
    %57 = vector.shape_cast %56 : vector<1x32x64xf32> to vector<32x64xf32>
    %cst_37 = arith.constant dense<0.000000e+00> : vector<16x64xf32>
    %58 = tpu.matmul %55, %57, %cst_37 {dimension_numbers = #tpu.dot_dimension_numbers<[1], [0], [0], [1], [0, 0, 1, 1], [], []>} : vector<16x32xf32>, vector<32x64xf32>, vector<16x64xf32> -> vector<16x64xf32>
    %c0_38 = arith.constant 0 : index
    %c0_39 = arith.constant 0 : index
    %c0_40 = arith.constant 0 : index
    %59 = vector.load %arg9[%c0_38, %c0_39, %c0_40] : memref<1x1x64xf32, #tpu.memory_space<vmem>>, vector<1x1x64xf32>
    %60 = vector.shape_cast %59 : vector<1x1x64xf32> to vector<1x64xf32>
    %61 = vector.broadcast %60 : vector<1x64xf32> to vector<16x64xf32>
    %62 = arith.addf %58, %61 : vector<16x64xf32>
    %cst_41 = arith.constant 0.000000e+00 : f32
    %63 = vector.broadcast %cst_41 : f32 to vector<16x64xf32>
    %64 = arith.maximumf %62, %63 : vector<16x64xf32>
    %c0_42 = arith.constant 0 : index
    %c0_43 = arith.constant 0 : index
    %c0_44 = arith.constant 0 : index
    %65 = vector.load %arg10[%c0_42, %c0_43, %c0_44] : memref<1x64x32xf32, #tpu.memory_space<vmem>>, vector<1x64x32xf32>
    %66 = vector.shape_cast %65 : vector<1x64x32xf32> to vector<64x32xf32>
    %cst_45 = arith.constant dense<0.000000e+00> : vector<16x32xf32>
    %67 = tpu.matmul %64, %66, %cst_45 {dimension_numbers = #tpu.dot_dimension_numbers<[1], [0], [0], [1], [0, 0, 1, 1], [], []>} : vector<16x64xf32>, vector<64x32xf32>, vector<16x32xf32> -> vector<16x32xf32>
    %68 = vector.extract_strided_slice %5 {offsets = [5, 0], sizes = [1, 32], strides = [1, 1]} : vector<7x32xf32> to vector<1x32xf32>
    %69 = vector.broadcast %68 : vector<1x32xf32> to vector<16x32xf32>
    %70 = arith.addf %67, %69 : vector<16x32xf32>
    %71 = arith.addf %55, %70 : vector<16x32xf32>
    %cst_46 = arith.constant dense<0.000000e+00> : vector<16xf32>
    %72 = vector.multi_reduction <add>, %71, %cst_46 [1] : vector<16x32xf32> to vector<16xf32>
    %73 = vector.shape_cast %72 : vector<16xf32> to vector<16x1xf32>
    %cst_47 = arith.constant 3.125000e-02 : f32
    %74 = vector.broadcast %cst_47 : f32 to vector<16x1xf32>
    %75 = arith.mulf %73, %74 : vector<16x1xf32>
    %76 = arith.mulf %71, %71 : vector<16x32xf32>
    %cst_48 = arith.constant dense<0.000000e+00> : vector<16xf32>
    %77 = vector.multi_reduction <add>, %76, %cst_48 [1] : vector<16x32xf32> to vector<16xf32>
    %78 = vector.shape_cast %77 : vector<16xf32> to vector<16x1xf32>
    %cst_49 = arith.constant 3.125000e-02 : f32
    %79 = vector.broadcast %cst_49 : f32 to vector<16x1xf32>
    %80 = arith.mulf %78, %79 : vector<16x1xf32>
    %81 = vector.broadcast %75 : vector<16x1xf32> to vector<16x32xf32>
    %82 = arith.subf %71, %81 : vector<16x32xf32>
    %83 = arith.mulf %75, %75 : vector<16x1xf32>
    %84 = arith.subf %80, %83 : vector<16x1xf32>
    %cst_50 = arith.constant 9.99999974E-6 : f32
    %85 = vector.broadcast %cst_50 : f32 to vector<16x1xf32>
    %86 = arith.addf %84, %85 : vector<16x1xf32>
    %87 = math.rsqrt %86 : vector<16x1xf32>
    %88 = vector.broadcast %87 : vector<16x1xf32> to vector<16x32xf32>
    %89 = arith.mulf %82, %88 : vector<16x32xf32>
    %90 = vector.extract_strided_slice %5 {offsets = [2, 0], sizes = [1, 32], strides = [1, 1]} : vector<7x32xf32> to vector<1x32xf32>
    %91 = vector.broadcast %90 : vector<1x32xf32> to vector<16x32xf32>
    %92 = arith.mulf %89, %91 : vector<16x32xf32>
    %93 = vector.extract_strided_slice %5 {offsets = [3, 0], sizes = [1, 32], strides = [1, 1]} : vector<7x32xf32> to vector<1x32xf32>
    %94 = vector.broadcast %93 : vector<1x32xf32> to vector<16x32xf32>
    %95 = arith.addf %92, %94 : vector<16x32xf32>
    %c0_51 = arith.constant 0 : index
    %c0_52 = arith.constant 0 : index
    %96 = vector.load %arg12[%c0_51, %c0_52] : memref<16x32xf32, #tpu.memory_space<vmem>>, vector<16x32xf32>
    tpu.vector_store %arg12[%c0_51, %c0_52], %95 {strides = array<i32>} : memref<16x32xf32, #tpu.memory_space<vmem>>, vector<16x32xf32>,
    return
  }
  func.func @transform_0(%arg0: i32, %arg1: i32) -> (i32, i32) {
    %c0_i32 = arith.constant 0 : i32
    %c0_i32_0 = arith.constant 0 : i32
    return %arg0, %c0_i32 : i32, i32
  }
  func.func @transform_1(%arg0: i32, %arg1: i32) -> (i32, i32) {
    %c0_i32 = arith.constant 0 : i32
    %c0_i32_0 = arith.constant 0 : i32
    return %arg0, %c0_i32 : i32, i32
  }
  func.func @transform_2(%arg0: i32, %arg1: i32) -> (i32, i32, i32) {
    %c0_i32 = arith.constant 0 : i32
    %c0_i32_0 = arith.constant 0 : i32
    %c0_i32_1 = arith.constant 0 : i32
    return %arg1, %c0_i32, %c0_i32_0 : i32, i32, i32
  }
  func.func @transform_3(%arg0: i32, %arg1: i32) -> (i32, i32, i32) {
    %c0_i32 = arith.constant 0 : i32
    %c0_i32_0 = arith.constant 0 : i32
    %c0_i32_1 = arith.constant 0 : i32
    return %arg1, %c0_i32, %c0_i32_0 : i32, i32, i32
  }
  func.func @transform_4(%arg0: i32, %arg1: i32) -> (i32, i32, i32) {
    %c0_i32 = arith.constant 0 : i32
    %c0_i32_0 = arith.constant 0 : i32
    %c0_i32_1 = arith.constant 0 : i32
    return %arg1, %c0_i32, %c0_i32_0 : i32, i32, i32
  }
  func.func @transform_5(%arg0: i32, %arg1: i32) -> (i32, i32, i32) {
    %c0_i32 = arith.constant 0 : i32
    %c0_i32_0 = arith.constant 0 : i32
    %c0_i32_1 = arith.constant 0 : i32
    return %arg1, %c0_i32, %c0_i32_0 : i32, i32, i32
  }
  func.func @transform_6(%arg0: i32, %arg1: i32) -> (i32, i32, i32) {
    %c0_i32 = arith.constant 0 : i32
    %c0_i32_0 = arith.constant 0 : i32
    %c0_i32_1 = arith.constant 0 : i32
    return %arg1, %c0_i32, %c0_i32_0 : i32, i32, i32
  }
  func.func @transform_7(%arg0: i32, %arg1: i32) -> (i32, i32, i32) {
    %c0_i32 = arith.constant 0 : i32
    %c0_i32_0 = arith.constant 0 : i32
    %c0_i32_1 = arith.constant 0 : i32
    return %arg1, %c0_i32, %c0_i32_0 : i32, i32, i32
  }
  func.func @transform_8(%arg0: i32, %arg1: i32) -> (i32, i32, i32) {
    %c0_i32 = arith.constant 0 : i32
    %c0_i32_0 = arith.constant 0 : i32
    %c0_i32_1 = arith.constant 0 : i32
    return %arg1, %c0_i32, %c0_i32_0 : i32, i32, i32
  }
  func.func @transform_9(%arg0: i32, %arg1: i32) -> (i32, i32, i32) {
    %c0_i32 = arith.constant 0 : i32
    %c0_i32_0 = arith.constant 0 : i32
    %c0_i32_1 = arith.constant 0 : i32
    return %arg1, %c0_i32, %c0_i32_0 : i32, i32, i32
  }
  func.func @transform_10(%arg0: i32, %arg1: i32) -> (i32, i32) {
    %c0_i32 = arith.constant 0 : i32
    %c0_i32_0 = arith.constant 0 : i32
    return %arg0, %c0_i32 : i32, i32
  }
}

</mosaic_0001>

<bundles_post_ra>
// kernel: tpu_custom_call.1
= control target key start
LH: loop header
LB: loop body
LE: loop exit
PB: predicated region body
PF: predicated region fallthrough
CT: control target
= control target key end

     0   :  { %s2926_s0 = inlined_call_operand.vmem [shape: f32[16,32], index: 0, kind: input, shape index: {}]   ;;  %s2927_s1 = inlined_call_operand.vmem [shape: f32[16,32], index: 1, kind: input, shape index: {}]   ;;  %s2928_s2 = inlined_call_operand.vmem [shape: f32[2,32,64], index: 2, kind: input, shape index: {}]   ;;  %s2929_s3 = inlined_call_operand.vmem [shape: f32[2,1,64], index: 3, kind: input, shape index: {}]   ;;  %s2930_s4 = inlined_call_operand.vmem [shape: f32[2,32,32], index: 4, kind: input, shape index: {}]   ;;  %s2931_s5 = inlined_call_operand.vmem [shape: f32[2,32,32], index: 5, kind: input, shape index: {}]   ;;  %s2932_s6 = inlined_call_operand.hbm [shape: f32[2,32,64], index: 6, kind: input, shape index: {}]   ;;  %s2933_s7 = inlined_call_operand.vmem [shape: f32[2,1,64], index: 7, kind: input, shape index: {}]   ;;  %s2934_s8 = inlined_call_operand.vmem [shape: f32[2,64,32], index: 8, kind: input, shape index: {}]   ;;  %s2935_s9 = inlined_call_operand.vmem [shape: f32[2,7,32], index: 9, kind: input, shape index: {}]   ;;  %s2936_s10 = inlined_call_operand.hbm [shape: f32[16,32], index: 10, kind: output, shape index: {}]  }
   0x1   :  { %2942 = sst [smem:[#allocation16_spill]] %s2928_s2 }
   0x2   :  { %2943 = sst [smem:[#allocation17_spill]] %s2932_s6 }
   0x3   :  { %15 = vsyncpa [#allocation6], 0 }
   0x4   :  { %17 = vsyncpa [#allocation6 + $0x1], 0 }
   0x5   :  { %18 = vsyncpa [#allocation7], 0  ;;  %s2566_s13 = smov 0   ;;  %s2568_s14 = smov 0  }
   0x6   :  { %s2570_s15 = smov 0   ;;  %s2572_s16 = smov 0  }
   0x7   :  { %s2574_s17 = smov 0   ;;  %s2576_s18 = smov 0  }
   0x8 LB: > { %2944 = sst [smem:[#allocation11_spill]] %s2471_s14  ;;  %s2937_s19 = sadd.s32 4294967295, %s2487_s18   ;;  %s2487_s18 = sphi %s2576_s18, %s24_s18   ;;  %s2483_s17 = sphi %s2574_s17, %s2961_s17   ;;  %s2479_s16 = sphi %s2572_s16, %s2960_s16   ;;  %s2475_s15 = sphi %s2570_s15, %s2959_s15   ;;  %s2471_s14 = sphi %s2568_s14, %s2958_s14   ;;  %s2467_s13 = sphi %s2566_s13, %s2957_s13  }
   0x9   : > { %2945 = sst [smem:[#allocation12_spill]] %s2475_s15  ;;  %s33_s20 = sadd.s32 1, %s2483_s17 }
   0xa   : > { %2946 = sst [smem:[#allocation13_spill]] %s2483_s17  ;;  %p34_p0 = scmp.ge.s32.totalorder %s33_s20, 2 }
   0xb   : > { %s199_s21 = sadd.s32 1, %s2475_s15  ;;  %p206_p1 = scmp.ne.s32.totalorder %s2475_s15, %s2471_s14 }
   0xc   : > { %p207_p2 = scmp.eq.s32.totalorder %s2487_s18, 0  ;;  %s2963_s20 = smov (%p34_p0, %s33_s20), 0 }
   0xd   : > { %2947 = sst [smem:[#allocation14_spill]] %s2963_s20  ;;  %p212_p4 = scmp.ne.s32.totalorder %s2471_s14, %s2467_s13 }
   0xe   : > { %p2602_p3 = por %p207_p2, %p206_p1  ;;  %s196_s23 = ssub.s32 %s2483_s17, %s2963_s20 }
   0xf   : > { %p213_p5 = scmp.eq.s32.totalorder %s2937_s19, 0  ;;  %p197_p6 = scmp.eq.s32.totalorder %s196_s23, 0 }
  0x10   : > { %p2273_p8 = scmp.lt.s32.totalorder %s2487_s18, 2  ;;  %s388_s26 = sand.u32 1, %s2475_s15  }
  0x11   : > { %p2611_p7 = por %p213_p5, %p212_p4  ;;  %s2057_s27 = sshll.u32 %s2483_s17, 9 }
  0x12   : > { %s2617_s25 = scalar_select %p197_p6, %s2475_s15, %s199_s21  }
  0x13   : > { %s2013_s28 = sshll.u32 %s388_s26, 5  ;;  %s2951_s6 = sld [smem:[#allocation17_spill]] }
  0x14   : > { %2950 = sst [smem:[#allocation15_spill]] %s2617_s25  ;;  %s392_s12 = scalar_lea.vmem [#allocation5], %s2013_s28 }
  0x15   : > { %s399_s13 = sshll.u32 %s392_s12, 4  ;;  %p2628_p9 = pnand %p2273_p8, %p2602_p3  ;;  %s2632_s13 = int_to_ptr.vmem [resolvable:$true] %s399_s13 }
  0x16   : > { %s2634_s21 = scalar_lea.sflag [#allocation6], %s388_s26 }
  0x17   : > { %p2375_p11 = pneg %p2628_p9 }
  0x19   : > { %s2624_s11 = scalar_lea.hbm %s2951_s6, %s2057_s27  ;;  %s2378_s28 = scalar_lea.hbm %s2951_s6, 1024 }
  0x1a   : > { %s2373_s29 = scalar_lea.hbm %s2624_s11, 512  ;;  %p2379_p0 = scmp.lt.u32.totalorder %s2624_s11, %s2951_s6 }
  0x1b   : > { %p2374_p10 = scmp.ne.s32.totalorder %s2624_s11, %s2373_s29  ;;  %p2380_p1 = scmp.lt.u32.totalorder %s2378_s28, %s2373_s29 }
  0x1c   : > { %p2382_p3 = scmp.lt.u32.totalorder %s2373_s29, %s2624_s11 }
  0x1d   : > { %p2376_p12 = pnand %p2375_p11, %p2374_p10  ;;  %p2381_p2 = por %p2380_p1, %p2379_p0 }
  0x1f   : > { %p2377_p13 = pneg %p2376_p12  ;;  %p2383_p4 = por %p2382_p3, %p2381_p2 }
  0x21   : > { %p2384_p5 = pnand %p2383_p4, %p2377_p13 }
  0x23   : > { %2387 = shalt.err (!%p2384_p5)
}
  0x24   : > { %s2388_s26 = scalar_lea.vmem %s2632_s13, 512  ;;  %s2493_s27 = smov [#allocation5]  }
  0x25   : > { %p2389_p6 = scmp.ne.s32.totalorder %s2632_s13, %s2388_s26  ;;  %s2393_s22 = sshll.u32 %s2493_s27, 4  ;;  %s2394_s22 = int_to_ptr.vmem [resolvable:$false] %s2393_s22 }
  0x26   : > { %s2395_s30 = scalar_lea.vmem %s2394_s22, 1024  ;;  %p2396_p12 = scmp.lt.s32.totalorder %s2632_s13, %s2394_s22 }
  0x27   : > { %p2391_p8 = pnand %p2389_p6, %p2375_p11  ;;  %p2397_p0 = scmp.lt.s32.totalorder %s2395_s30, %s2388_s26 }
  0x29   : > { %p2392_p10 = pneg %p2391_p8  ;;  %p2398_p1 = por %p2397_p0, %p2396_p12 }
  0x2b   : > { %p2399_p2 = pnand %p2398_p1, %p2392_p10 }
  0x2d   : > { %2402 = shalt.err (!%p2399_p2)
}
  0x2e   : > { %s2494_s29 = smov 128   ;;  %s2495_s28 = smov 8  }
  0x2f   : > { %2272 = dma.hbm_to_vmem [thread:$0]  (!%p2628_p9), %s2624_s11, 512, %s2632_s13, %s2634_s21, %s2494_s29, %s2494_s29, %s2495_s28  }
  0x30   : > { %p2016_p11 = scmp.ge.s32.totalorder %s2487_s18, 1  ;;  %p428_p13 = scmp.lt.s32.totalorder %s2487_s18, 3 }
  0x32   : > { %p429_p3 = pnand %p2016_p11, %p428_p13 }
  0x33   : > { %s434_s12 = sand.u32 (!%p429_p3), 1, %s2471_s14  }
  0x34   : > { %432 = sbr.rel (%p429_p3) target bundleno = 2835 (0xb13), region = 60  ;;  %s2017_s26 = sshll.u32 (!%p429_p3), %s434_s12, 5 }
  0x35   : > { %s435_s27 = scalar_lea.sflag (!%p429_p3), [#allocation6], %s434_s12  ;;  %s2665_s22 = scalar_lea.vmem (!%p429_p3), [#allocation5], %s2017_s26 }
  0x3b   : > { %2458 = dma.done.wait (%p2611_p7), %s435_s27, 512  }
  0x3c   : > { %2460 = vsyncadd (%p2611_p7), %s435_s27, 4294966784  ;;  %p522_p4 = scmp.lt.s32.totalorder %s2479_s16, 1  ;;  %s2953_s2 = sld [smem:[#allocation16_spill]] }
  0x3d   : > { %p2027_p7 = scmp.ne.s32.totalorder %s2479_s16, 0 }
  0x3e   : > { %s2673_s11 = scalar_select %p522_p4, %s2479_s16, 1 }
  0x3f   : > { %556 = sbr.rel (%p2027_p7) target bundleno = 70 (0x46), region = 68  ;;  %v557_v0 = vld [vmem:[%s2926_s0] sm:$0xff] (!%p2027_p7)  ;;  %vm559_vm0 = vcmask (!%p2027_p7), 261120   ;;  %v558_v1 = vld [vmem:[%s2926_s0 + $0x8] sm:$0xff] (!%p2027_p7) }
  0x40   : > { %s2058_s13 = sshll.u32 %s2673_s11, 5  ;;  %s542_s15 = scalar_lea.vmem %s2933_s7, %s2673_s11  ;;  %560 = vst.msk [vmem:[#allocation8] sm:$0xff] (!%p2027_p7), %vm559_vm0, %v557_v0  ;;  %561 = vst.msk [vmem:[#allocation8 + $0x8] sm:$0xff] (!%p2027_p7), %vm559_vm0, %v558_v1 }
  0x41   : > { %s534_s27 = scalar_lea.vmem %s2930_s4, %s2058_s13  ;;  %s2689_s20 = scalar_lea.vmem %s2931_s5, %s2058_s13 }
  0x42   : > { %s526_s24 = scalar_lea.vmem %s2953_s2, %s2058_s13  ;;  %s2061_s14 = sshll.u32 %s2673_s11, 6 }
  0x43   : > { %s2026_s23 = sshll.u32 %s2673_s11, 3  ;;  %s2700_s29 = scalar_lea.vmem %s2934_s8, %s2061_s14 }
  0x44   : > { %s2705_s12 = scalar_lea.vmem %s2935_s9, %s2026_s23 }
  0x46 PF: > { %v569_v2 = vld [vmem:[%s526_s24] sm:$0xff]  ;;  %v570_v3 = vld [vmem:[%s526_s24 + $0x8] sm:$0xff]  ;;  %vm580_vm1 = vcmask 261120   ;;  %v571_v7 = vld [vmem:[%s526_s24 + $0x10] sm:$0xff]  ;;  %v666_v20 = vlaneseq  ;;  %s2954_s26 = scalar_lea.vmem %s2929_s3, %s2673_s11  ;;  %vm751_vm2 = vcmask 523264  }
  0x47   : > { %v662_v4 = vld [vmem:[%s534_s27] sm:$0xff]  ;;  %v2215_v5 = vpack.c.bf16 %v570_v3, %v569_v2  ;;  %v663_v6 = vld [vmem:[%s534_s27 + $0x8] sm:$0xff]  ;;  %v572_v8 = vld [vmem:[%s526_s24 + $0x18] sm:$0xff] }
  0x48   : > { %v2223_v9 = vpack.c.bf16 %v663_v6, %v662_v4  ;;  %v2219_v10 = vpack.c.bf16 %v572_v8, %v571_v7  ;;  %v664_v11 = vld [vmem:[%s534_s27 + $0x10] sm:$0xff]  ;;  %v665_v12 = vld [vmem:[%s534_s27 + $0x18] sm:$0xff]  ;;  %v565_v15 = vld [vmem:[%s2927_s1] sm:$0xff]  ;;  %v2732_v21 = vshrl.u32 %v666_v20, 7  ;;  %s2748_s27 = smov 0  }
  0x49   : > { %v2714_v13 = vld [vmem:[#allocation8] sm:$0xff]  ;;  %2216 = vmatprep.subr.bf16.mxu0 %v2215_v5  ;;  %v2227_v14 = vpack.c.bf16 %v665_v12, %v664_v11  ;;  %v2722_v17 = vld [vmem:[#allocation8 + $0x8] sm:$0xff]  ;;  %v566_v18 = vld [vmem:[%s2927_s1 + $0x8] sm:$0xff] }
  0x4a   : > { %2131 = vmatprep.mubr.msk.f32.mxu1 %vm580_vm1, %v2714_v13  ;;  %2224 = vmatprep.subr.bf16.mxu1 %v2223_v9  ;;  %v567_v16 = vadd.f32 %v565_v15, %v2714_v13  ;;  %v568_v19 = vadd.f32 %v566_v18, %v2722_v17  ;;  %v668_v22 = vsub.s32 6, %v2732_v21  ;;  %v2736_v23 = vld [vmem:[%s2705_s12] sm:$0x7f] }
  0x4b   : > { %2218 = vmatpush3.bf16.msra.mxu0 %v2215_v5  ;;  %2226 = vmatpush3.bf16.msra.mxu1 %v2223_v9  ;;  %v2028_v24 = vld [vmem:[%s2954_s26] ss:$0 sm:$0xff] }
  0x4c   : > { %2220 = vmatprep.subr.bf16.mxu0 %v2219_v10  ;;  %2228 = vmatprep.subr.bf16.mxu1 %v2227_v14  ;;  %v669_v25 = vrot.slane %v2736_v23, %v668_v22 }
  0x4d   : > { %2120 = vmatprep.mubr.msk.f32.mxu0 %vm580_vm1, %v567_v16 }
  0x4f   : > { %2222 = vmatpush3.bf16.msra.mxu0 %v2219_v10  ;;  %2230 = vmatpush3.bf16.msra.mxu1 %v2227_v14 }
  0x52   : > { %2121 = vmatmul.mubr.msk.f32.vlgmr.msra.gmra.mrb[0].mxu0 %vm580_vm1, %v568_v19  ;;  %2132 = vmatmul.mubr.msk.f32.vlgmr.msra.gmra.mrb[0].mxu1 %vm580_vm1, %v2722_v17 }
 0x125   : > { %v2122_v26 = vpop.f32.mrb[0].mxu0  ;;  %v2133_v28 = vpop.f32.mrb[0].mxu1 }
 0x126   : > { %v659_v27 = vadd.f32 %v2122_v26, %v2028_v24  ;;  %v653_v29 = vpop.f32.mrb[1].mxu0  ;;  %v748_v30 = vadd.f32 %v2133_v28, %v669_v25  ;;  %v742_v32 = vpop.f32.mrb[1].mxu1 }
 0x127   : > { %v654_v31 = vadd.f32 %v2028_v24, %v653_v29  ;;  %v743_v33 = vadd.f32 %v742_v32, %v669_v25 }
 0x128   : > { %753 = vst.msk [vmem:[#allocation2 + $0x8] sm:$0xff] %vm751_vm2, %v659_v27 }
 0x129   : > { %755 = vst.msk [vmem:[#allocation3 + $0x8] sm:$0xff] %vm580_vm1, %v748_v30  ;;  %754 = vst.msk [vmem:[#allocation3] sm:$0xff] %vm580_vm1, %v743_v33 }
 0x12a   : > { %752 = vst.msk [vmem:[#allocation2] sm:$0xff] %vm751_vm2, %v654_v31 }
 0x12b LB: >> { %v2496_v34 = vmov 0.0   ;;  %vm2497_vm3 = vmmov 0   ;;  %s2757_s23 = sshll.u32 %s2491_s27, 3  ;;  %s2498_s28 = smov 96   ;;  %vm770_vm4 = vcmask 64512   ;;  %vm1442_vm5 = vcmask 130048   ;;  %s2491_s27 = sphi %s2748_s27, %s761_s27  }
 0x12c   : >> { %2134 = vmatprep.subr.mxu0 %v2496_v34  ;;  %2136 = vmatprep.mubr.msk.f32.mxu0 %vm2497_vm3, %v2496_v34  ;;  %s763_s21 = scalar_lea.vmem [#allocation2], %s2757_s23  ;;  %s2499_s12 = smov 88   ;;  %vm1444_vm6 = vcmask 195584  }
 0x12d   : >> { %2139 = vmatprep.subr.mxu1 %v2496_v34  ;;  %2141 = vmatprep.mubr.msk.f32.mxu1 %vm2497_vm3, %v2496_v34  ;;  %s2500_s6 = smov 120   ;;  %s2501_s19 = smov 80  }
 0x12e   : >> { %s2502_s17 = smov 112   ;;  %s2503_s25 = smov 104  }
 0x12f   : >> { %s765_s2 = scalar_lea.vmem [#allocation3], %s2757_s23  ;;  %s2504_s14 = smov 72  }
 0x130   : >> { %v2774_v45 = vld [vmem:[%s765_s2] sm:$0xff]  ;;  %s2505_s16 = smov 8   ;;  %s2506_s13 = smov 16  }
 0x131   : >> { %v764_v35 = vld [vmem:[%s763_s21] sm:$0xff]  ;;  %2140 = vmatpush3.msra.mxu1 %v2774_v45  ;;  %s2507_s30 = smov 24   ;;  %s1446_s24 = scalar_lea.vmem [#allocation4], %s2757_s23 }
 0x132   : >> { %768 = vrot.lane.b32.xlu0 %v764_v35, %s2498_s28  ;;  %932 = vrot.lane.b32.xlu1 %v764_v35, %s2499_s12  ;;  %s761_s27 = sadd.s32 1, %s2491_s27  }
 0x133   : >> { %2144 = vmatprep.subr.mxu1 %v2496_v34  ;;  %p758_p9 = scmp.ge.s32.totalorder %s761_s27, 2  }
 0x136   : >> { %930 = vrot.lane.b32.xlu1 %v764_v35, %s2500_s6 }
 0x13a   : >> { %1099 = vrot.lane.b32.xlu1 %v764_v35, %s2501_s19 }
 0x13e   : >> { %1097 = vrot.lane.b32.xlu1 %v764_v35, %s2502_s17 }
 0x1a4   : >> { %v769_v36 = vpop.permute.xlu0 %768  ;;  %v933_v46 = vpop.permute.xlu1 %932 }
 0x1a5   : >> { %2135 = vmatpush3.xpose.msk.msra.mxu0 %vm770_vm4, %v769_v36 }
 0x1a6   : >> { %2149 = vmatprep.subr.mxu0 %v2496_v34 }
 0x1a8   : >> { %2137 = vmatmul.mubr.msk.f32.vlgmr.msra.gmra.mrb[0].mxu0 %vm770_vm4, %v764_v35  ;;  %v931_v47 = vpop.permute.xlu1 %930 }
 0x1a9   : >> { %2151 = vmatprep.mubr.msk.f32.mxu0 %vm2497_vm3, %v2496_v34 }
 0x1ac   : >> { %v1100_v48 = vpop.permute.xlu1 %1099 }
 0x1b0   : >> { %v1098_v49 = vpop.permute.xlu1 %1097 }
 0x27b   : >> { %v841_v37 = vpop.f32.mrb[0].mxu0 }
 0x27c   : >> { %v2138_v38 = vpop.f32.mrb[1].mxu0  ;;  %v845_v39 = vsel %vm770_vm4, %v841_v37, -inf }
 0x27d   : >> { %846 = vmax.xlane.f32.xlu0 %v845_v39 }
 0x293   : >> { %1263 = vrot.lane.b32.xlu0 %v764_v35, %s2503_s25 }
 0x30a   : >> { %v847_v40 = vpop.xlane.xlu0 %846 }
 0x30b   : >> { %v848_v41 = vsub.f32 %v841_v37, %v847_v40 }
 0x30d   : >> { %v849_v42 = vmul.f32 1.442695, %v848_v41 }
 0x30e   : >> { %v1264_v54 = vpop.permute.xlu0 %1263 }
 0x30f   : >> { %2349 = vpow2.f32 %v849_v42 }
 0x319   : >> { %v2350_v43 = vpop.eup %2349 }
 0x31a   : >> { %v851_v44 = vsel %vm770_vm4, %v2350_v43, 0.0 }
 0x31b   : >> { %852 = vadd.xlane.f32.xlu1 %v851_v44 }
 0x32c   : >> { %1265 = vrot.lane.b32.xlu1 %v764_v35, %s2504_s14 }
 0x3a8   : >> { %v853_v50 = vpop.xlane.xlu1 %852 }
 0x3a9   : >> { %2351 = vrcp.f32 %v853_v50 }
 0x3ac   : >> { %v1266_v53 = vpop.permute.xlu1 %1265 }
 0x3b3   : >> { %v2352_v51 = vpop.eup %2351 }
 0x3b4   : >> { %v856_v52 = vmul.f32 %v2352_v51, %v2350_v43 }
 0x3b6   : >> { %2142 = vmatmul.mubr.msk.f32.vlgmr.msra.gmra.mrb[0].mxu1 %vm770_vm4, %v856_v52 }
 0x3b7   : >> { %2145 = vmatpush3.xpose.msk.msra.mxu1 %vm770_vm4, %v933_v46  ;;  %2146 = vmatprep.mubr.msk.f32.mxu1 %vm2497_vm3, %v2496_v34  ;;  %v1451_v46 = vld [vmem:[%s2689_s20 + $0x8] sm:$0xff] (%p758_p9) }
 0x3b8   : >> { %2154 = vmatprep.subr.mxu1 %v2496_v34 }
 0x3ba   : >> { %2147 = vmatmul.mubr.msk.f32.vlgmr.msra.gmra.mrb[2].mxu1 %vm770_vm4, %v931_v47  ;;  %v1452_v47 = vld [vmem:[%s2689_s20 + $0x10] sm:$0xff] (%p758_p9) }
 0x3bb   : >> { %2155 = vmatpush3.xpose.msk.msra.mxu1 %vm770_vm4, %v1100_v48  ;;  %2156 = vmatprep.mubr.msk.f32.mxu1 %vm2497_vm3, %v2496_v34 }
 0x3bc   : >> { %2164 = vmatprep.subr.mxu1 %v2496_v34 }
 0x3be   : >> { %2157 = vmatmul.mubr.msk.f32.vlgmr.msra.gmra.mrb[4].mxu1 %vm770_vm4, %v1098_v49  ;;  %v1453_v49 = vld [vmem:[%s2689_s20 + $0x18] sm:$0xff] (%p758_p9) }
 0x3bf   : >> { %2165 = vmatpush3.xpose.msk.msra.mxu1 %vm770_vm4, %v1266_v53  ;;  %2166 = vmatprep.mubr.msk.f32.mxu1 %vm2497_vm3, %v2496_v34  ;;  %v2235_v51 = vpack.c.bf16 (%p758_p9), %v1453_v49, %v1452_v47  ;;  %v1456_v53 = vsub.s32 (%p758_p9), 4, %v2732_v21  ;;  %v1684_v49 = vld [vmem:[%s2700_s29 + $0x38] sm:$0xff] (%p758_p9) }
 0x3c2   : >> { %2167 = vmatmul.mubr.msk.f32.vlgmr.msra.gmra.mrb[6].mxu1 %vm770_vm4, %v1264_v54  ;;  %v1457_v54 = vrot.slane (%p758_p9), %v2736_v23, %v1456_v53 }
 0x489   : >> { %v2793_v55 = vpop.f32.mrb[0].mxu1 }
 0x48a   : >> { %v2143_v56 = vpop.f32.mrb[1].mxu1 }
 0x48d   : >> { %v1004_v57 = vpop.f32.mrb[2].mxu1 }
 0x48e   : >> { %v2148_v58 = vpop.f32.mrb[3].mxu1  ;;  %v1008_v59 = vsel %vm770_vm4, %v1004_v57, -inf }
 0x48f   : >> { %1009 = vmax.xlane.f32.xlu1 %v1008_v59 }
 0x491   : >> { %v1171_v60 = vpop.f32.mrb[4].mxu1 }
 0x492   : >> { %v2158_v61 = vpop.f32.mrb[5].mxu1  ;;  %v1175_v62 = vsel %vm770_vm4, %v1171_v60, -inf }
 0x493   : >> { %1176 = vmax.xlane.f32.xlu0 %v1175_v62 }
 0x495   : >> { %v1337_v63 = vpop.f32.mrb[6].mxu1 }
 0x496   : >> { %v2168_v0 = vpop.f32.mrb[7].mxu1  ;;  %v1341_v1 = vsel %vm770_vm4, %v1337_v63, -inf }
 0x497   : >> { %1342 = vmax.xlane.f32.xlu1 %v1341_v1 }
 0x4a8   : >> { %1187 = vrot.lane.b32.xlu1 %v2774_v45, %s2502_s17 }
 0x4a9   : >> { %1021 = vrot.lane.b32.xlu0 %v2774_v45, %s2500_s6 }
 0x51c   : >> { %v1010_v2 = vpop.xlane.xlu1 %1009 }
 0x51d   : >> { %v1011_v3 = vsub.f32 %v1004_v57, %v1010_v2  ;;  %v1584_v2 = vld [vmem:[%s2665_s22 + $0x8] sm:$0xff] (%p758_p9) }
 0x51f   : >> { %v1012_v4 = vmul.f32 1.442695, %v1011_v3  ;;  %v1585_v3 = vld [vmem:[%s2665_s22 + $0x10] sm:$0xff] (%p758_p9) }
 0x520   : >> { %v1177_v5 = vpop.xlane.xlu0 %1176 }
 0x521   : >> { %2353 = vpow2.f32 %v1012_v4  ;;  %v1178_v6 = vsub.f32 %v1171_v60, %v1177_v5  ;;  %v1586_v5 = vld [vmem:[%s2665_s22 + $0x18] sm:$0xff] (%p758_p9) }
 0x523   : >> { %v1179_v7 = vmul.f32 1.442695, %v1178_v6  ;;  %v2243_v6 = vpack.c.bf16 (%p758_p9), %v1586_v5, %v1585_v3 }
 0x524   : >> { %v1343_v8 = vpop.xlane.xlu1 %1342  ;;  %v1022_v19 = vpop.permute.xlu0 %1021 }
 0x525   : >> { %2355 = vpow2.f32 %v1179_v7  ;;  %v1344_v9 = vsub.f32 %v1337_v63, %v1343_v8  ;;  %2150 = vmatpush3.msra.mxu0 %v1022_v19  ;;  %v1677_v7 = vld [vmem:[%s2700_s29] sm:$0xff] (%p758_p9)  ;;  %v1678_v8 = vld [vmem:[%s2700_s29 + $0x8] sm:$0xff] (%p758_p9) }
 0x526   : >> { %2159 = vmatprep.subr.mxu0 %v2496_v34 }
 0x527   : >> { %v1345_v10 = vmul.f32 1.442695, %v1344_v9  ;;  %v1679_v9 = vld [vmem:[%s2700_s29 + $0x10] sm:$0xff] (%p758_p9) }
 0x528   : >> { %v1188_v20 = vpop.permute.xlu1 %1187 }
 0x529   : >> { %2357 = vpow2.f32 %v1345_v10  ;;  %v2247_v10 = vpack.c.bf16 (%p758_p9), %v1678_v8, %v1677_v7 }
 0x52b   : >> { %v2354_v11 = vpop.eup %2353 }
 0x52c   : >> { %v1014_v12 = vsel %vm770_vm4, %v2354_v11, 0.0 }
 0x52d   : >> { %1015 = vadd.xlane.f32.xlu1 %v1014_v12 }
 0x52f   : >> { %v2356_v14 = vpop.eup %2355 }
 0x530   : >> { %v1181_v15 = vsel %vm770_vm4, %v2356_v14, 0.0 }
 0x531   : >> { %1182 = vadd.xlane.f32.xlu1 %v1181_v15  ;;  %v1682_v15 = vld [vmem:[%s2700_s29 + $0x28] sm:$0xff] (%p758_p9) }
 0x533   : >> { %v2358_v16 = vpop.eup %2357 }
 0x534   : >> { %v1347_v18 = vsel %vm770_vm4, %v2358_v16, 0.0 }
 0x535   : >> { %1348 = vadd.xlane.f32.xlu1 %v1347_v18 }
 0x546   : >> { %1353 = vrot.lane.b32.xlu1 %v2774_v45, %s2503_s25  ;;  %v1450_v45 = vld [vmem:[%s2689_s20] sm:$0xff] (%p758_p9) }
 0x547   : > { %v2231_v48 = vpack.c.bf16 (%p758_p9), %v1451_v46, %v1450_v45 }
 0x549   : > { %2232 = vmatprep.subr.bf16.mxu1 (%p758_p9), %v2231_v48 }
 0x54a   : > { %2234 = vmatpush3.bf16.msra.mxu1 (%p758_p9), %v2231_v48  ;;  %v1683_v48 = vld [vmem:[%s2700_s29 + $0x30] sm:$0xff] (%p758_p9) }
 0x54b   : > { %2236 = vmatprep.subr.bf16.mxu1 (%p758_p9), %v2235_v51 }
 0x54e   : > { %2238 = vmatpush3.bf16.msra.mxu1 (%p758_p9), %v2235_v51  ;;  %v2048_v51 = vld [vmem:[%s542_s15] ss:$0 sm:$0xff] (%p758_p9)  ;;  %s2508_s15 = smov (%p758_p9), [#allocation8]  }
 0x54f   : > { %s1825_s11 = sshll.u32 (%p758_p9), %s2508_s15, 4  ;;  %s1826_s11 = int_to_ptr.vmem [resolvable:$true] %s1825_s11 }
 0x550   : > { %s2403_s27 = scalar_lea.vmem (%p758_p9), %s1826_s11, 256  ;;  %p2410_p12 = scmp.lt.s32.totalorder (%p758_p9), %s1826_s11, %s1826_s11 }
 0x551   : > { %p2404_p6 = scmp.ne.s32.totalorder (%p758_p9), %s1826_s11, %s2403_s27  ;;  %p2411_p0 = scmp.lt.s32.totalorder (%p758_p9), %s2403_s27, %s2403_s27 }
 0x553   : > { %p2412_p1 = por (%p758_p9), %p2411_p0, %p2410_p12 }
 0x5ba   : >> { %v1016_v22 = vpop.xlane.xlu1 %1015 }
 0x5bb   : >> { %2359 = vrcp.f32 %v1016_v22 }
 0x5be   : >> { %v1183_v24 = vpop.xlane.xlu1 %1182 }
 0x5bf   : >> { %2361 = vrcp.f32 %v1183_v24 }
 0x5c2   : >> { %v1349_v25 = vpop.xlane.xlu1 %1348 }
 0x5c3   : >> { %2363 = vrcp.f32 %v1349_v25 }
 0x5c5   : >> { %v2360_v26 = vpop.eup %2359 }
 0x5c6   : >> { %v1019_v27 = vmul.f32 %v2360_v26, %v2354_v11  ;;  %v1354_v30 = vpop.permute.xlu1 %1353  ;;  %v1680_v11 = vld [vmem:[%s2700_s29 + $0x18] sm:$0xff] (%p758_p9) }
 0x5c7   : > { %v2251_v12 = vpack.c.bf16 (%p758_p9), %v1680_v11, %v1679_v9 }
 0x5c8   : >> { %2152 = vmatmul.mubr.msk.f32.vlgmr.msra.gmra.mrb[2].mxu0 %vm770_vm4, %v1019_v27 }
 0x5c9   : >> { %v2362_v28 = vpop.eup %2361  ;;  %2160 = vmatpush3.msra.mxu0 %v1188_v20  ;;  %2161 = vmatprep.mubr.msk.f32.mxu0 %vm2497_vm3, %v2496_v34 }
 0x5ca   : >> { %v1186_v29 = vmul.f32 %v2362_v28, %v2356_v14  ;;  %2169 = vmatprep.subr.mxu0 %v2496_v34  ;;  %v1681_v14 = vld [vmem:[%s2700_s29 + $0x20] sm:$0xff] (%p758_p9)  ;;  %s2955_s29 = sadd.s32 (%p758_p9), 4294967295, %s2487_s18  }
 0x5cb   : > { %p2880_p5 = scmp.eq.s32.totalorder (%p758_p9), %s2955_s29, 1 }
 0x5cc   : >> { %2162 = vmatmul.mubr.msk.f32.vlgmr.msra.gmra.mrb[4].mxu0 %vm770_vm4, %v1186_v29 }
 0x5cd   : >> { %v2364_v31 = vpop.eup %2363  ;;  %2170 = vmatpush3.msra.mxu0 %v1354_v30  ;;  %2171 = vmatprep.mubr.msk.f32.mxu0 %vm2497_vm3, %v2496_v34  ;;  %p2405_p8 = pnand (%p758_p9), %p2404_p6, %p2880_p5 }
 0x5ce   : >> { %v1352_v32 = vmul.f32 %v2364_v31, %v2358_v16  ;;  %2248 = vmatprep.subr.bf16.mxu0 (%p758_p9), %v2247_v10  ;;  %v2255_v16 = vpack.c.bf16 (%p758_p9), %v1682_v15, %v1681_v14 }
 0x5cf   : > { %p2406_p10 = pneg (%p758_p9), %p2405_p8 }
 0x5d0   : >> { %2172 = vmatmul.mubr.msk.f32.vlgmr.msra.gmra.mrb[6].mxu0 %vm770_vm4, %v1352_v32 }
 0x5d1   : > { %2250 = vmatpush3.bf16.msra.mxu0 (%p758_p9), %v2247_v10  ;;  %p2413_p2 = pnand (%p758_p9), %p2412_p1, %p2406_p10 }
 0x5d2   : > { %2252 = vmatprep.subr.bf16.mxu0 (%p758_p9), %v2251_v12 }
 0x5d5   : > { %2254 = vmatpush3.bf16.msra.mxu0 (%p758_p9), %v2251_v12 }
 0x5d6   : > { %2256 = vmatprep.subr.bf16.mxu0 (%p758_p9), %v2255_v16 }
 0x5d9   : > { %2258 = vmatpush3.bf16.msra.mxu0 (%p758_p9), %v2255_v16 }
 0x69b   : >> { %v1093_v33 = vpop.f32.mrb[2].mxu0 }
 0x69c   : >> { %1430 = vrot.lane.b32.xlu0 %v1093_v33, %s2505_s16  ;;  %v2153_v35 = vpop.f32.mrb[3].mxu0 }
 0x69d   : > { %v1573_v35 = vsub.s32 (%p758_p9), 0, %v2732_v21 }
 0x69f   : >> { %v1259_v36 = vpop.f32.mrb[4].mxu0 }
 0x6a0   : >> { %1434 = vrot.lane.b32.xlu1 %v1259_v36, %s2506_s13  ;;  %v2163_v37 = vpop.f32.mrb[5].mxu0  ;;  %v1579_v36 = vsub.s32 (%p758_p9), 1, %v2732_v21 }
 0x6a3   : >> { %v1425_v38 = vpop.f32.mrb[6].mxu0 }
 0x6a4   : >> { %1438 = vrot.lane.b32.xlu0 %v1425_v38, %s2507_s30  ;;  %v2173_v39 = vpop.f32.mrb[7].mxu0  ;;  %v1574_v38 = vrot.slane (%p758_p9), %v2736_v23, %v1573_v35 }
 0x70e   : >> { %v1431_v40 = vpop.permute.xlu0 %1430 }
 0x70f   : >> { %v1441_v34 = vsel %vm770_vm4, %v2793_v55, %v1431_v40 }
 0x712   : >> { %v1435_v41 = vpop.permute.xlu1 %1434  ;;  %760 = sbr.rel (!%p758_p9) target bundleno = 299 (0x12b), region = 139 }
 0x713   : >> { %v1443_v42 = vsel %vm1442_vm5, %v1441_v34, %v1435_v41  ;;  %v1580_v41 = vrot.slane (%p758_p9), %v2736_v23, %v1579_v36 }
 0x716   : >> { %v1439_v43 = vpop.permute.xlu0 %1438 }
 0x717   : >> { %v1445_v44 = vsel %vm1444_vm6, %v1443_v42, %v1439_v43 }
 0x718   : >> { %1447 = vst.msk [vmem:[%s1446_s24] sm:$0xff] %vm580_vm1, %v1445_v44 }
 0x71f   : > { %v1448_v50 = vld [vmem:[#allocation4] sm:$0xff]  ;;  %v1449_v52 = vld [vmem:[#allocation4 + $0x8] sm:$0xff] }
 0x720   : > { %2182 = vmatprep.mubr.msk.f32.mxu1 %vm580_vm1, %v1448_v50  ;;  %v2259_v50 = vpack.c.bf16 %v1684_v49, %v1683_v48 }
 0x721   : > { %2183 = vmatmul.mubr.msk.f32.vlgmr.msra.gmra.mrb[0].mxu1 %vm580_vm1, %v1449_v52 }
 0x722   : > { %2260 = vmatprep.subr.bf16.mxu0 %v2259_v50 }
 0x723   : > { %2262 = vmatpush3.bf16.msra.mxu0 %v2259_v50 }
 0x7f4   : > { %v2184_v55 = vpop.f32.mrb[0].mxu1 }
 0x7f5   : > { %v1536_v56 = vadd.f32 %v2184_v55, %v1457_v54  ;;  %v1530_v57 = vpop.f32.mrb[1].mxu1 }
 0x7f6   : > { %v1531_v58 = vadd.f32 %v1530_v57, %v1457_v54 }
 0x7f7   : > { %v2832_v59 = vadd.f32 %v1536_v56, %v2722_v17 }
 0x7f8   : > { %v1539_v60 = vadd.f32 %v1531_v58, %v2714_v13  ;;  %v1583_v13 = vld [vmem:[%s2665_s22] sm:$0xff]  ;;  %v1687_v58 = vsub.s32 5, %v2732_v21 }
 0x7f9   : > { %v1550_v0 = vmul.f32 %v2832_v59, %v2832_v59  ;;  %v1544_v1 = vsel %vm580_vm1, %v2832_v59, 0.0  ;;  %v2239_v4 = vpack.c.bf16 %v1584_v2, %v1583_v13 }
 0x7fa   : > { %v1541_v61 = vsel %vm580_vm1, %v1539_v60, 0.0  ;;  %v1549_v62 = vmul.f32 %v1539_v60, %v1539_v60 }
 0x7fb   : > { %1542 = vadd.xlane.f32.xlu0 %v1541_v61  ;;  %v1554_v17 = vsel %vm580_vm1, %v1550_v0, 0.0  ;;  %2240 = vmatprep.subr.bf16.mxu1 %v2239_v4 }
 0x7fc   : > { %v1551_v63 = vsel %vm580_vm1, %v1549_v62, 0.0  ;;  %2242 = vmatpush3.bf16.msra.mxu1 %v2239_v4 }
 0x7fd   : > { %1552 = vadd.xlane.f32.xlu1 %v1551_v63  ;;  %2244 = vmatprep.subr.bf16.mxu1 %v2243_v6 }
 0x7ff   : > { %1545 = vadd.xlane.f32.xlu0 %v1544_v1 }
 0x800   : > { %2246 = vmatpush3.bf16.msra.mxu1 %v2243_v6 }
 0x801   : > { %1555 = vadd.xlane.f32.xlu1 %v1554_v17 }
 0x888   : > { %v1543_v18 = vpop.xlane.xlu0 %1542 }
 0x889   : > { %v1547_v19 = vmul.f32 0.03125, %v1543_v18 }
 0x88a   : > { %v1553_v20 = vpop.xlane.xlu1 %1552 }
 0x88b   : > { %v1561_v22 = vmul.f32 %v1547_v19, %v1547_v19  ;;  %v1557_v24 = vmul.f32 0.03125, %v1553_v20  ;;  %v1559_v37 = vsub.f32 %v1539_v60, %v1547_v19 }
 0x88c   : > { %v1546_v25 = vpop.xlane.xlu0 %1545 }
 0x88d   : > { %v1563_v26 = vsub.f32 %v1557_v24, %v1561_v22  ;;  %v1548_v27 = vmul.f32 0.03125, %v1546_v25  ;;  %v1804_v24 = vsub.s32 2, %v2732_v21  ;;  %v1810_v25 = vsub.s32 3, %v2732_v21 }
 0x88e   : > { %v1556_v28 = vpop.xlane.xlu1 %1555 }
 0x88f   : > { %v1565_v29 = vadd.f32 1e-05, %v1563_v26  ;;  %v1562_v30 = vmul.f32 %v1548_v27, %v1548_v27  ;;  %v1558_v31 = vmul.f32 0.03125, %v1556_v28  ;;  %v1560_v34 = vsub.f32 %v2832_v59, %v1548_v27 }
 0x890   : > { %v1688_v59 = vrot.slane %v2736_v23, %v1687_v58  ;;  %v1805_v27 = vrot.slane %v2736_v23, %v1804_v24 }
 0x891   : > { %2365 = vrsqrt.f32 %v1565_v29  ;;  %v1564_v32 = vsub.f32 %v1558_v31, %v1562_v30 }
 0x893   : > { %v1566_v33 = vadd.f32 1e-05, %v1564_v32  ;;  %v1811_v32 = vrot.slane %v2736_v23, %v1810_v25 }
 0x895   : > { %2367 = vrsqrt.f32 %v1566_v33 }
 0x89b   : > { %v2366_v39 = vpop.eup %2365 }
 0x89c   : > { %v1569_v40 = vmul.f32 %v2366_v39, %v1559_v37 }
 0x89e   : > { %v1575_v42 = vmul.f32 %v1574_v38, %v1569_v40 }
 0x89f   : > { %v2368_v43 = vpop.eup %2367 }
 0x8a0   : > { %v1581_v44 = vadd.f32 %v1580_v41, %v1575_v42  ;;  %v1570_v45 = vmul.f32 %v2368_v43, %v1560_v34 }
 0x8a2   : > { %2193 = vmatprep.mubr.msk.f32.mxu1 %vm580_vm1, %v1581_v44  ;;  %v1576_v46 = vmul.f32 %v1574_v38, %v1570_v45 }
 0x8a4   : > { %v1582_v47 = vadd.f32 %v1580_v41, %v1576_v46 }
 0x8a6   : > { %2194 = vmatmul.mubr.msk.f32.vlgmr.msra.gmra.mrb[2].mxu1 %vm580_vm1, %v1582_v47 }
 0x979   : > { %v2195_v52 = vpop.f32.mrb[2].mxu1 }
 0x97a   : > { %v1672_v53 = vadd.f32 %v2195_v52, %v2048_v51  ;;  %v1666_v54 = vpop.f32.mrb[3].mxu1 }
 0x97b   : > { %v1667_v55 = vadd.f32 %v2048_v51, %v1666_v54 }
 0x97c   : > { %v1676_v57 = vmax.f32 %v1672_v53, 0.0 }
 0x97d   : > { %v1675_v56 = vmax.f32 %v1667_v55, 0.0 }
 0x97f   : > { %2212 = vmatprep.mubr.msk.f32.mxu0 %vm751_vm2, %v1675_v56 }
 0x980   : > { %2213 = vmatmul.mubr.msk.f32.vlgmr.msra.gmra.mrb[0].mxu0 %vm751_vm2, %v1676_v57 }
 0xa53   : > { %v2214_v60 = vpop.f32.mrb[0].mxu0 }
 0xa54   : > { %v1767_v61 = vadd.f32 %v2214_v60, %v1688_v59  ;;  %v1761_v62 = vpop.f32.mrb[1].mxu0 }
 0xa55   : > { %v1762_v63 = vadd.f32 %v1761_v62, %v1688_v59 }
 0xa56   : > { %v1771_v0 = vadd.f32 %v1767_v61, %v1582_v47 }
 0xa57   : > { %v1770_v1 = vadd.f32 %v1762_v63, %v1581_v44 }
 0xa58   : > { %v1775_v17 = vsel %vm580_vm1, %v1771_v0, 0.0  ;;  %v1781_v13 = vmul.f32 %v1771_v0, %v1771_v0 }
 0xa59   : > { %1776 = vadd.xlane.f32.xlu1 %v1775_v17  ;;  %v1772_v2 = vsel %vm580_vm1, %v1770_v1, 0.0  ;;  %v1780_v3 = vmul.f32 %v1770_v1, %v1770_v1 }
 0xa5a   : > { %1773 = vadd.xlane.f32.xlu0 %v1772_v2  ;;  %v1785_v4 = vsel %vm580_vm1, %v1781_v13, 0.0 }
 0xa5b   : > { %v1782_v5 = vsel %vm580_vm1, %v1780_v3, 0.0 }
 0xa5d   : > { %1786 = vadd.xlane.f32.xlu1 %v1785_v4 }
 0xa5e   : > { %1783 = vadd.xlane.f32.xlu0 %v1782_v5 }
 0xae6   : > { %v1777_v6 = vpop.xlane.xlu1 %1776 }
 0xae7   : > { %v1779_v7 = vmul.f32 0.03125, %v1777_v6  ;;  %v1774_v8 = vpop.xlane.xlu0 %1773 }
 0xae8   : > { %v1778_v9 = vmul.f32 0.03125, %v1774_v8 }
 0xae9   : > { %v1793_v11 = vmul.f32 %v1779_v7, %v1779_v7  ;;  %v1791_v26 = vsub.f32 %v1771_v0, %v1779_v7 }
 0xaea   : > { %v1787_v10 = vpop.xlane.xlu1 %1786  ;;  %v1792_v15 = vmul.f32 %v1778_v9, %v1778_v9  ;;  %v1790_v29 = vsub.f32 %v1770_v1, %v1778_v9 }
 0xaeb   : > { %v1789_v12 = vmul.f32 0.03125, %v1787_v10  ;;  %v1784_v14 = vpop.xlane.xlu0 %1783 }
 0xaec   : > { %v1788_v16 = vmul.f32 0.03125, %v1784_v14 }
 0xaed   : > { %v1795_v18 = vsub.f32 %v1789_v12, %v1793_v11 }
 0xaee   : > { %v1794_v19 = vsub.f32 %v1788_v16, %v1792_v15 }
 0xaef   : > { %v1797_v20 = vadd.f32 1e-05, %v1795_v18 }
 0xaf0   : > { %v1796_v22 = vadd.f32 1e-05, %v1794_v19 }
 0xaf1   : > { %2369 = vrsqrt.f32 %v1797_v20 }
 0xaf2   : > { %2371 = vrsqrt.f32 %v1796_v22 }
 0xafb   : > { %v2370_v28 = vpop.eup %2369 }
 0xafc   : > { %v2372_v30 = vpop.eup %2371  ;;  %v1801_v31 = vmul.f32 %v2370_v28, %v1791_v26 }
 0xafd   : > { %v1800_v33 = vmul.f32 %v2372_v30, %v1790_v29 }
 0xafe   : > { %v1807_v35 = vmul.f32 %v1805_v27, %v1801_v31 }
 0xaff   : > { %v1806_v36 = vmul.f32 %v1805_v27, %v1800_v33 }
 0xb00   : > { %v1813_v37 = vadd.f32 %v1811_v32, %v1807_v35 }
 0xb01   : > { %v1812_v21 = vadd.f32 %v1811_v32, %v1806_v36 }
 0xb02   : > { %1815 = vst.msk [vmem:[#allocation8 + $0x8] sm:$0xff] %vm580_vm1, %v1813_v37 }
 0xb03   : > { %1814 = vst.msk [vmem:[#allocation8] sm:$0xff] %vm580_vm1, %v1812_v21 }
 0xb04   : > { %2416 = shalt.err (!%p2413_p2)
}
 0xb05   : > { %s2417_s28 = scalar_lea.hbm %s2936_s10, 256 }
 0xb06   : > { %p2418_p11 = scmp.ne.s32.totalorder %s2936_s10, %s2417_s28  ;;  %p2423_p4 = scmp.lt.u32.totalorder %s2417_s28, %s2936_s10 }
 0xb08   : > { %p2419_p13 = pnand %p2418_p11, %p2880_p5 }
 0xb0a   : > { %p2420_p3 = pneg %p2419_p13 }
 0xb0c   : > { %p2425_p7 = pnand %p2423_p4, %p2420_p3 }
 0xb0e   : > { %2428 = shalt.err (!%p2425_p7)
}
 0xb0f   : > { %s2509_s25 = smov 128   ;;  %s2510_s2 = smov 8  }
 0xb10   : > { %2266 = dma.vmem_to_hbm [thread:$0]  (%p2880_p5), %s1826_s11, 256, %s2936_s10, [#allocation7], %s2509_s25, %s2509_s25, %s2510_s2  }
 0xb11   : > { %2462 = dma.done.wait (%p2880_p5), [#allocation7], 256  }
 0xb12   : > { %2464 = vsyncadd (%p2880_p5), [#allocation7], 4294967040 }
 0xb13 PF: > { %s24_s18 = sadd.s32 1, %s2487_s18   ;;  %s2957_s13 = sld [smem:[#allocation11_spill]] }
 0xb14   : > { %p21_p9 = scmp.ge.s32.totalorder %s24_s18, 4   ;;  %s2958_s14 = sld [smem:[#allocation12_spill]] }
 0xb15   : > { %s2959_s15 = sld [smem:[#allocation15_spill]]  ;;  %s2960_s16 = sld [smem:[#allocation13_spill]] }
 0xb16   : > { %s2961_s17 = sld [smem:[#allocation14_spill]]  ;;  %23 = sbr.rel (!%p21_p9) target bundleno = 8 (0x8), region = 150 }
 0xb1d   :  { %1841 = vsyncpa [#allocation6], 1 }
 0xb1e   :  { %1843 = vsyncpa [#allocation6 + $0x1], 1 }
 0xb1f   :  { %1844 = vsyncpa [#allocation7], 1 }
 0xb20   :  { %1846 = vsyncpa [#allocation7 + $0x1], 1 }

</bundles_post_ra>
